<compile_context>
chip_gen: v7x
topology: tpu7x:2x2x1
jax: 0.10.0
libtpu: 0.0.40
codegen_flags: <defaults>
</compile_context>

<pallas_src>
import functools

import jax
import jax.numpy as jnp
from jax import lax
from jax.experimental import pallas as pl
from jax.experimental.pallas import tpu as pltpu

_LANES = 128
_SUBLANES = 8
_TARGET_TILE_BYTES = 4 * 1024 * 1024   # ~4 MiB per tile buffer
_VMEM_LIMIT_BYTES = 48 * 1024 * 1024   # safe on v5e/v6e (128 MiB) and v7x (64 MiB)
_MIN_TILE_ROWS = 512                   # floor so tiles never get silly-small
_MAX_INT_CHAIN = 64                    # |exponent| handled by multiply chain


def _round_up(v, m):
    return ((v + m - 1) // m) * m


def _int_pow_chain(x, n):
    """x ** n for python int n >= 1 via binary exponentiation (VPU multiplies only)."""
    result = None
    base = x
    while True:
        if n & 1:
            result = base if result is None else result * base
        n >>= 1
        if n == 0:
            break
        base = base * base
    return result


def _apply_power(x, power):
    """Elementwise x ** power with EUP-avoiding fast paths for common exponents."""
    p = float(power)
    if p == 0.0:
        return jnp.ones_like(x)
    if p == 1.0:
        return x
    if p == 2.0:
        return x * x
    if p == 3.0:
        return x * x * x
    if p == -1.0:
        return pl.reciprocal(x)
    if p == 0.5:
        return jnp.sqrt(x)
    if p == -0.5:
        return lax.rsqrt(x)
    if p.is_integer() and abs(p) <= _MAX_INT_CHAIN:
        y = _int_pow_chain(x, int(abs(p)))
        if p < 0:
            y = pl.reciprocal(y)
        return y
    if (p * 2.0).is_integer() and abs(p) <= _MAX_INT_CHAIN:
        # x ** (m/2) = sqrt(x) ** m  (NaN for x < 0, matching torch.pow for
        # non-integer exponents). One sqrt + short multiply chain keeps the
        # single EUP slot from becoming the binding unit at v7x bandwidth.
        m = int(round(abs(p) * 2.0))
        y = _int_pow_chain(jnp.sqrt(x), m)
        if p < 0:
            y = pl.reciprocal(y)
        return y
    # General exponent: exp/log pair on the EUP. NaN for negative bases,
    # matching torch.pow semantics for non-integer exponents.
    return jnp.power(x, jnp.asarray(p, dtype=x.dtype))


def _power_kernel(x_ref, o_ref, *, power, compute_dtype):
    x = x_ref[...]
    if x.dtype != compute_dtype:
        x = x.astype(compute_dtype)
    o_ref[...] = _apply_power(x, power).astype(o_ref.dtype)


def _pick_compute_dtype(dtype, power):
    """bf16 stays native for pure multiply-chain exponents; otherwise upcast."""
    p = float(power)
    chain_only = p.is_integer() and abs(p) <= _MAX_INT_CHAIN
    if dtype == jnp.bfloat16:
        return jnp.bfloat16 if chain_only else jnp.float32
    if dtype == jnp.float16:
        return jnp.float32
    return dtype


def _cost_per_elem(power):
    """(flops, transcendentals) per element — advisory only, for CostEstimate."""
    p = float(power)

    def chain_muls(n):
        return max(0, n.bit_length() - 1) + max(0, bin(n).count("1") - 1)

    if p.is_integer() and abs(p) <= _MAX_INT_CHAIN:
        return chain_muls(int(abs(p))) + (1 if p < 0 else 0), (1 if p < 0 else 0)
    if (p * 2.0).is_integer() and abs(p) <= _MAX_INT_CHAIN:
        return chain_muls(int(round(abs(p) * 2.0))), 1 + (1 if p < 0 else 0)
    return 1, 2


def nn_power_forward(x, power):
    """Apply x ** power elementwise via a Pallas TPU kernel (torch.pow semantics)."""
    p = float(power)
    orig_shape = x.shape
    total = x.size

    # --- trivial exponents: skip the kernel (and the HBM read for p == 0) ----
    if p == 1.0:
        return x
    if p == 0.0:
        return jnp.ones_like(x)
    if total == 0:
        return x

    # Integer inputs: keep integer dtype for non-negative integer exponents
    # (matches torch); otherwise promote to float32.
    if jnp.issubdtype(x.dtype, jnp.integer) and not (p.is_integer() and p >= 0):
        # TODO(synk): torch raises for negative integer exponents on int tensors;
        # we promote to float32 instead.
        x = x.astype(jnp.float32)

    out_dtype = x.dtype
    if jnp.issubdtype(out_dtype, jnp.integer):
        compute_dtype = out_dtype
    else:
        compute_dtype = _pick_compute_dtype(out_dtype, p)

    # --- flatten to a lane-dense (rows, 128) slab, zero-copy when 128-aligned -
    x_flat = jnp.ravel(x)
    tail_pad = (-total) % _LANES
    if tail_pad:
        # Rare non-128-aligned case: pad to the next multiple of 128 with 1.0
        # (so negative exponents never create inf/NaN in the pad region) and
        # slice it back off afterwards.
        x_flat = jnp.pad(x_flat, (0, tail_pad), constant_values=1)
    rows = (total + tail_pad) // _LANES
    x2d = x_flat.reshape(rows, _LANES)

    # --- byte-based tile sizing + megacore-friendly grid ---------------------
    size_itemsize = max(jnp.dtype(out_dtype).itemsize, jnp.dtype(compute_dtype).itemsize)
    block_rows = max(_MIN_TILE_ROWS,
                     _round_up(_TARGET_TILE_BYTES // (_LANES * size_itemsize), _SUBLANES))

    if rows <= _MIN_TILE_ROWS:
        tile_rows = rows  # single full-extent block (allowed even if rows % 8 != 0)
    else:
        # Aim for >= ~4 grid blocks so v7x's 2 TensorCores both get work and each
        # still double-buffers, without shrinking tiles below the minimum or
        # growing them past the ~4 MiB target.
        tile_rows = min(block_rows, _round_up(pl.cdiv(rows, 4), _SUBLANES))
        tile_rows = max(tile_rows, _MIN_TILE_ROWS)

    grid = (pl.cdiv(rows, tile_rows),)

    flops_pe, trans_pe = _cost_per_elem(p)
    cost = pl.CostEstimate(
        flops=max(1, flops_pe) * total,
        transcendentals=trans_pe * total,
        bytes_accessed=2 * total * jnp.dtype(out_dtype).itemsize,
    )

    kernel = functools.partial(_power_kernel, power=p, compute_dtype=compute_dtype)

    out2d = pl.pallas_call(
        kernel,
        out_shape=jax.ShapeDtypeStruct((rows, _LANES), out_dtype),
        grid_spec=pltpu.PrefetchScalarGridSpec(
            num_scalar_prefetch=0,
            grid=grid,
            in_specs=[pl.BlockSpec((tile_rows, _LANES), lambda i: (i, 0))],
            out_specs=pl.BlockSpec((tile_rows, _LANES), lambda i: (i, 0)),
        ),
        compiler_params=pltpu.CompilerParams(
            dimension_semantics=("parallel",),
            vmem_limit_bytes=_VMEM_LIMIT_BYTES,
        ),
        cost_estimate=cost,
        input_output_aliases={0: 0},
    )(x2d)

    if tail_pad:
        return out2d.reshape(-1)[:total].reshape(orig_shape)
    return out2d.reshape(orig_shape)


if __name__ == "__main__":
    # Deterministic "module parameter": power (from nnPower.__init__).
    POWER = 3.0

    key = jax.random.PRNGKey(0)
    x = jax.random.normal(key, (2, 4, 16, 16), dtype=jnp.float32)  # NCHW

    y = jax.block_until_ready(nn_power_forward(x, POWER))
    ref = jnp.power(x, POWER)
    assert y.shape == x.shape and y.dtype == x.dtype
    assert jnp.allclose(y, ref, atol=1e-6, rtol=1e-6)

    # Half-integer fast path on a non-128-aligned shape (ragged/pad fallback).
    x2 = jnp.abs(jax.random.normal(jax.random.PRNGKey(0), (3, 5, 7), jnp.float32)) + 0.1
    y2 = jax.block_until_ready(nn_power_forward(x2, 1.5))
    assert jnp.allclose(y2, jnp.power(x2, 1.5), atol=1e-5, rtol=1e-5)

    # Trivial exponents short-circuit at the wrapper.
    assert nn_power_forward(x, 1.0) is x
    assert jnp.allclose(nn_power_forward(x, 0.0), jnp.ones_like(x))

    print("KERNEL_OK")
</pallas_src>

<mosaic_0001>
module attributes {stable_mosaic.version = 11 : i64} {
  func.func @_power_kernel(%arg0: i32, %arg1: memref<16x128xf32, #tpu.memory_space<vmem>>, %arg2: memref<16x128xf32, #tpu.memory_space<vmem>>) attributes {dimension_semantics = [#tpu.dimension_semantics<parallel>], iteration_bounds = array<i64: 1>, scalar_prefetch = 0 : i64, scratch_operands = 0 : i64, tpu.core_type = #tpu.core_type<tc>, window_params = [{transform_indices = @transform_0, window_bounds = array<i64: 16, 128>}, {transform_indices = @transform_1, window_bounds = array<i64: 16, 128>}]} {
    %c0 = arith.constant 0 : index
    %c0_0 = arith.constant 0 : index
    %0 = vector.load %arg1[%c0, %c0_0] : memref<16x128xf32, #tpu.memory_space<vmem>>, vector<16x128xf32>
    %1 = arith.mulf %0, %0 : vector<16x128xf32>
    %2 = arith.mulf %1, %0 : vector<16x128xf32>
    %c0_1 = arith.constant 0 : index
    %c0_2 = arith.constant 0 : index
    %3 = vector.load %arg2[%c0_1, %c0_2] : memref<16x128xf32, #tpu.memory_space<vmem>>, vector<16x128xf32>
    tpu.vector_store %arg2[%c0_1, %c0_2], %2 {strides = array<i32>} : memref<16x128xf32, #tpu.memory_space<vmem>>, vector<16x128xf32>,
    return
  }
  func.func @transform_0(%arg0: i32) -> (i32, i32) {
    %c0_i32 = arith.constant 0 : i32
    %c0_i32_0 = arith.constant 0 : i32
    return %arg0, %c0_i32 : i32, i32
  }
  func.func @transform_1(%arg0: i32) -> (i32, i32) {
    %c0_i32 = arith.constant 0 : i32
    %c0_i32_0 = arith.constant 0 : i32
    return %arg0, %c0_i32 : i32, i32
  }
}

</mosaic_0001>

<bundles_post_ra>
// kernel: tpu_custom_call.1
= control target key start
LH: loop header
LB: loop body
LE: loop exit
PB: predicated region body
PF: predicated region fallthrough
CT: control target
= control target key end

     0   :  { %6 = vsyncpa [#allocation3], 0  ;;  %s144_s0 = inlined_call_operand.hbm [shape: f32[16,128], index: 0, kind: input, shape index: {}, may-alias: {0,1}]   ;;  %s145_s1 = inlined_call_operand.hbm [shape: f32[16,128], index: 1, kind: output, shape index: {}, may-alias: {0,1}]  }
   0x1   :  { %7 = vsyncpa [#allocation4], 0  ;;  %s100_s6 = smov [#allocation2]   ;;  %s52_s10 = scalar_lea.hbm %s144_s0, 256 }
   0x2   :  { %s13_s7 = sshll.u32 %s100_s6, 4  ;;  %p53_p0 = scmp.ne.s32.totalorder %s144_s0, %s52_s10  ;;  %s14_s7 = int_to_ptr.vmem [resolvable:$true] %s13_s7 }
   0x3   :  { %p56_p1 = scmp.lt.u32.totalorder %s52_s10, %s144_s0 }
   0x5   :  { %p58_p2 = pnand %p56_p1, %p53_p0 }
   0x7   :  { %61 = shalt.err (!%p58_p2)
}
   0x8   :  { %s62_s15 = scalar_lea.vmem %s14_s7, 256  ;;  %p67_p4 = scmp.lt.s32.totalorder %s14_s7, %s14_s7 }
   0x9   :  { %p63_p3 = scmp.ne.s32.totalorder %s14_s7, %s62_s15  ;;  %p68_p5 = scmp.lt.s32.totalorder %s62_s15, %s62_s15 }
   0xb   :  { %p69_p6 = por %p68_p5, %p67_p4 }
   0xd   :  { %p70_p7 = pnand %p69_p6, %p63_p3 }
   0xf   :  { %73 = shalt.err (!%p70_p7)
}
  0x10   :  { %s101_s16 = smov 128   ;;  %s102_s17 = smov 8  }
  0x11   :  { %19 = dma.hbm_to_vmem [thread:$0]  %s144_s0, 256, %s14_s7, [#allocation3], %s101_s16, %s101_s16, %s102_s17  }
  0x12   :  { %96 = dma.done.wait [#allocation3], 256  }
  0x13   :  { %97 = vsyncadd [#allocation3], 4294967040  ;;  %v23_v0 = vld [vmem:[#allocation2] sm:$0xff]  ;;  %v24_v1 = vld [vmem:[#allocation2 + $0x8] sm:$0xff]  ;;  %s103_s20 = smov [#allocation5]  }
  0x14   :  { %s36_s21 = sshll.u32 %s103_s20, 4  ;;  %v25_v2 = vmul.f32 %v23_v0, %v23_v0  ;;  %v26_v3 = vmul.f32 %v24_v1, %v24_v1  ;;  %s37_s21 = int_to_ptr.vmem [resolvable:$true] %s36_s21 }
  0x15   :  { %s74_s22 = scalar_lea.vmem %s37_s21, 256  ;;  %p79_p9 = scmp.lt.s32.totalorder %s37_s21, %s37_s21 }
  0x16   :  { %v27_v4 = vmul.f32 %v25_v2, %v23_v0  ;;  %v28_v5 = vmul.f32 %v26_v3, %v24_v1  ;;  %p75_p8 = scmp.ne.s32.totalorder %s37_s21, %s74_s22  ;;  %p80_p10 = scmp.lt.s32.totalorder %s74_s22, %s74_s22 }
  0x18   :  { %29 = vst [vmem:[#allocation5] sm:$0xff] %v27_v4  ;;  %30 = vst [vmem:[#allocation5 + $0x8] sm:$0xff] %v28_v5  ;;  %p81_p11 = por %p80_p10, %p79_p9 }
  0x1a   :  { %p82_p12 = pnand %p81_p11, %p75_p8 }
  0x1c   :  { %85 = shalt.err (!%p82_p12)
}
  0x1d   :  { %s86_s24 = scalar_lea.hbm %s145_s1, 256 }
  0x1e   :  { %p87_p13 = scmp.ne.s32.totalorder %s145_s1, %s86_s24  ;;  %p90_p0 = scmp.lt.u32.totalorder %s86_s24, %s145_s1 }
  0x20   :  { %p92_p1 = pnand %p90_p0, %p87_p13 }
  0x22   :  { %95 = shalt.err (!%p92_p1)
}
  0x23   :  { %42 = dma.vmem_to_hbm [thread:$0]  %s37_s21, 256, %s145_s1, [#allocation4], %s101_s16, %s101_s16, %s102_s17  }
  0x24   :  { %98 = dma.done.wait [#allocation4], 256  }
  0x25   :  { %99 = vsyncadd [#allocation4], 4294967040 }
  0x26   :  { %46 = vsyncpa [#allocation3], 1 }
  0x27   :  { %47 = vsyncpa [#allocation4], 1 }

</bundles_post_ra>
